<compile_context>
chip_gen: v5e
topology: v5e:2x2
jax: 0.10.0
libtpu: 0.0.40
codegen_flags: <defaults>
</compile_context>

<pallas_src>
import jax
import jax.numpy as jnp
from jax import lax
from jax.experimental import pallas as pl
from jax.experimental.pallas import tpu as pltpu

_LANES = 128
_SUB = 8


def _build_alpha(alpha, num_class, balance_index=-1):
    """Mirror FocalLoss_Ori.__init__ alpha handling; returns a host tuple of floats."""
    if isinstance(alpha, (float, int)) and not isinstance(alpha, bool):
        assert 0 < alpha < 1.0, 'alpha should be in `(0,1)`'
        assert balance_index > -1
        a = [1.0 - float(alpha)] * num_class
        a[balance_index] = float(alpha)
        return tuple(a)
    if hasattr(alpha, "tolist"):
        alpha = alpha.tolist()
    a = tuple(float(v) for v in alpha)
    assert len(a) == num_class, "len(alpha) must equal num_class"
    return a


def focal_loss_ori(probs_nchw, target_nhw, *, alpha, gamma=2, balance_index=-1,
                   size_average=True, apply_alpha=True, eps=1e-6, tile_pixels=65536):
    """Pallas TPU forward of FocalLoss_Ori.

    probs_nchw : (N, C, H, W) class probabilities (f32 or bf16; the PyTorch module logs the
                 gathered value directly, i.e. it expects softmax-ed inputs).
    target_nhw : (N, H, W) integer class labels.
    alpha      : per-class weights (len C sequence/array) or scalar + balance_index,
                 exactly as in the module's __init__.
    """
    N, C, H, W = probs_nchw.shape
    HW = H * W
    M = N * HW                                     # true element count for the mean

    alpha_t = _build_alpha(alpha, C, balance_index)
    alpha_uniform = len(set(alpha_t)) == 1
    use_alpha_vec = apply_alpha and not alpha_uniform
    gamma_f = float(gamma)

    x_bytes = jnp.dtype(probs_nchw.dtype).itemsize
    align = 16 if x_bytes < 4 else 8               # sub-32-bit dtypes pack rows in pairs

    # ---- choose the pixel-row tile: TS sublane rows of 128 pixels per grid step ----
    S = pl.cdiv(HW, _LANES)
    budget = 26 * 1024 * 1024                      # double-buffered bytes per grid step
    cap_rows = max(align, (budget // (2 * _LANES * (C * x_bytes + 4))) // align * align)
    ts_target = max(align,
                    min(cap_rows, (max(tile_pixels, _LANES) // _LANES) // align * align))
    if S <= ts_target:
        TS, num_tiles = S, 1                       # full-dim block: any S is legal
    else:
        TS = ts_target                             # multiple of `align`; last block may be partial
        num_tiles = pl.cdiv(S, TS)

    # ---- reshape the native contiguous layout (no transpose, no big pad) ----
    x = probs_nchw.reshape(N, C, HW)
    t = target_nhw.reshape(N, HW).astype(jnp.int32)
    if HW % _LANES != 0:
        # TODO(synk): rare fallback copy (HW not a multiple of 128); a lane-ragged gather
        # DMA would avoid this extra pass over the probs tensor.
        HW128 = S * _LANES
        x = jnp.pad(x, ((0, 0), (0, 0), (0, HW128 - HW)))
        t = jnp.pad(t, ((0, 0), (0, HW128 - HW)))
    x = x.reshape(N, C, S, _LANES)
    t = t.reshape(N, S, _LANES)

    need_mask = (num_tiles * TS * _LANES) != HW    # partial last block and/or lane padding
    CH = min(64, TS)                               # sublane-chunk rows inside the kernel

    def kernel(x_ref, t_ref, out_ref):
        # x_ref  : (1, C, TS, 128) probabilities (partial last block is masked)
        # t_ref  : (1, TS, 128)    int32 labels
        # out_ref: (1, 1, 8, 128)  f32 per-tile partial sum
        j = pl.program_id(1)

        def tile_loss(row0, rows):
            sl = pl.ds(row0, rows)
            lab = t_ref[0, sl, :]
            picked = x_ref[0, 0, sl, :].astype(jnp.float32)
            if use_alpha_vec:
                a_cls = jnp.full((rows, _LANES), alpha_t[0], dtype=jnp.float32)
            for c in range(1, C):
                m = lab == c
                xc = x_ref[0, c, sl, :].astype(jnp.float32)
                picked = jnp.where(m, xc, picked)
                if use_alpha_vec:
                    a_cls = jnp.where(m, jnp.float32(alpha_t[c]), a_cls)
            pt = picked + jnp.float32(eps)
            logpt = jnp.log(pt)                                     # EUP
            if use_alpha_vec:
                logpt = a_cls * logpt
            one_m = 1.0 - pt
            if gamma_f.is_integer():
                modulator = lax.integer_pow(one_m, int(gamma_f))    # safe for tiny negatives
            else:
                modulator = one_m ** jnp.float32(gamma_f)
            loss = -modulator * logpt
            if need_mask:                                            # compiled in only if needed
                r = lax.broadcasted_iota(jnp.int32, (rows, _LANES), 0)
                l = lax.broadcasted_iota(jnp.int32, (rows, _LANES), 1)
                pix = (j * TS + row0 + r) * _LANES + l
                loss = jnp.where(pix < HW, loss, 0.0)
            return loss

        def fold(acc, loss, rows):
            # Sum `rows` sublane rows of loss into the (8,128) accumulator (VALU adds only;
            # the <8-row tail uses one tiny cross-sublane reduce).
            g8 = (rows // _SUB) * _SUB
            if g8:
                part = loss[0:_SUB]
                for g in range(1, g8 // _SUB):
                    part = part + loss[g * _SUB:(g + 1) * _SUB]
                acc = acc + part
            if rows > g8:
                tail = jnp.sum(loss[g8:rows], axis=0, keepdims=True)         # (1,128)
                row0sel = lax.broadcasted_iota(jnp.int32, (_SUB, _LANES), 0) == 0
                acc = acc + jnp.where(row0sel, tail, 0.0)
            return acc

        n_full = TS // CH
        rem = TS - n_full * CH

        def chunk_body(ci, acc):
            row0 = ci * CH
            if CH % _SUB == 0:
                row0 = pl.multiple_of(row0, _SUB)
            return fold(acc, tile_loss(row0, CH), CH)

        acc = jnp.zeros((_SUB, _LANES), jnp.float32)
        acc = lax.fori_loop(0, n_full, chunk_body, acc, unroll=(n_full <= 8))
        if rem:
            acc = fold(acc, tile_loss(n_full * CH, rem), rem)
        out_ref[0, 0] = acc

    cost = pl.CostEstimate(
        flops=int((3 * C + 10) * M),
        transcendentals=int(M),
        bytes_accessed=int(M * (C * x_bytes + 4) + N * num_tiles * _SUB * _LANES * 4),
    )

    partial = pl.pallas_call(
        kernel,
        out_shape=jax.ShapeDtypeStruct((N, num_tiles, _SUB, _LANES), jnp.float32),
        grid_spec=pltpu.PrefetchScalarGridSpec(
            num_scalar_prefetch=0,
            grid=(N, num_tiles),
            in_specs=[
                pl.BlockSpec((1, C, TS, _LANES), lambda n, j: (n, 0, j, 0)),
                pl.BlockSpec((1, TS, _LANES), lambda n, j: (n, j, 0)),
            ],
            out_specs=pl.BlockSpec((1, 1, _SUB, _LANES), lambda n, j: (n, j, 0, 0)),
        ),
        compiler_params=pltpu.CompilerParams(
            dimension_semantics=("parallel", "parallel"),
            vmem_limit_bytes=32 * 1024 * 1024,
        ),
        cost_estimate=cost,
    )(x, t)

    total = jnp.sum(partial)                        # tiny XLA epilogue reduce
    if apply_alpha and alpha_uniform:
        total = total * jnp.float32(alpha_t[0])     # uniform alpha applied once, not per pixel
    if size_average:
        return total / jnp.float32(M)
    return total


def focal_loss_ori_ref(probs_nchw, target_nhw, alpha, gamma=2, balance_index=-1,
                       size_average=True, apply_alpha=True, eps=1e-6):
    """Pure-JAX reference mirroring the PyTorch forward."""
    N, C, H, W = probs_nchw.shape
    alpha_t = jnp.asarray(_build_alpha(alpha, C, balance_index), jnp.float32)
    x = jnp.transpose(probs_nchw, (0, 2, 3, 1)).reshape(-1, C).astype(jnp.float32)
    t = target_nhw.reshape(-1).astype(jnp.int32)
    pt = jnp.take_along_axis(x, t[:, None], axis=1)[:, 0] + eps
    logpt = jnp.log(pt)
    if apply_alpha:
        logpt = alpha_t[t] * logpt
    one_m = 1.0 - pt
    g = float(gamma)
    modulator = lax.integer_pow(one_m, int(g)) if g.is_integer() else one_m ** g
    loss = -modulator * logpt
    return jnp.mean(loss) if size_average else jnp.sum(loss)


if __name__ == "__main__":
    key = jax.random.PRNGKey(0)

    def make(case_key, N, C, H, W):
        k1, k2 = jax.random.split(case_key)
        logits = jax.random.normal(k1, (N, C, H, W), dtype=jnp.float32)
        probs = jax.nn.softmax(logits, axis=1)      # module gathers probabilities then .log()
        target = jax.random.randint(k2, (N, H, W), 0, C, dtype=jnp.int32)
        return probs, target

    k1, k2, k3, k4 = jax.random.split(key, 4)

    # 1) canonical small case: single tile, uniform alpha, mean reduction.
    probs, target = make(k1, 2, 4, 16, 16)
    a = [0.25, 0.25, 0.25, 0.25]
    out = jax.block_until_ready(focal_loss_ori(probs, target, alpha=a, gamma=2))
    ref = focal_loss_ori_ref(probs, target, a, gamma=2)
    assert jnp.allclose(out, ref, rtol=1e-5, atol=1e-6), (out, ref)

    # 2) lane-ragged spatial size (20*20=400, not a multiple of 128) + non-uniform alpha.
    probs, target = make(k2, 2, 4, 20, 20)
    a = [0.1, 0.2, 0.3, 0.4]
    out = jax.block_until_ready(focal_loss_ori(probs, target, alpha=a, gamma=2))
    ref = focal_loss_ori_ref(probs, target, a, gamma=2)
    assert jnp.allclose(out, ref, rtol=1e-5, atol=1e-6), (out, ref)

    # 3) multi-tile grid with a ragged (partial) last tile, sum reduction, no alpha.
    probs, target = make(k3, 1, 3, 48, 48)         # S=18, TS=8 -> 3 tiles, last one partial
    a = [0.3, 0.3, 0.4]
    out = jax.block_until_ready(
        focal_loss_ori(probs, target, alpha=a, gamma=2, size_average=False,
                       apply_alpha=False, tile_pixels=1024))
    ref = focal_loss_ori_ref(probs, target, a, gamma=2, size_average=False, apply_alpha=False)
    assert jnp.allclose(out, ref, rtol=1e-4, atol=1e-3), (out, ref)

    # 4) multi-chunk inner loop (TS=128 -> 2 chunks of 64 rows) + fractional gamma.
    probs, target = make(k4, 1, 4, 128, 128)
    a = [0.1, 0.4, 0.3, 0.2]
    out = jax.block_until_ready(focal_loss_ori(probs, target, alpha=a, gamma=1.5))
    ref = focal_loss_ori_ref(probs, target, a, gamma=1.5)
    assert jnp.allclose(out, ref, rtol=1e-5, atol=1e-6), (out, ref)

    print("KERNEL_OK")
</pallas_src>

<mosaic_0001>
module attributes {stable_mosaic.version = 11 : i64} {
  func.func @kernel(%arg0: i32, %arg1: i32, %arg2: memref<1x4x2x128xf32, #tpu.memory_space<vmem>>, %arg3: memref<1x2x128xi32, #tpu.memory_space<vmem>>, %arg4: memref<1x1x8x128xf32, #tpu.memory_space<vmem>>) attributes {dimension_semantics = [#tpu.dimension_semantics<parallel>, #tpu.dimension_semantics<parallel>], iteration_bounds = array<i64: 2, 1>, scalar_prefetch = 0 : i64, scratch_operands = 0 : i64, tpu.core_type = #tpu.core_type<tc>, window_params = [{transform_indices = @transform_0, window_bounds = array<i64: 1, 4, 2, 128>}, {transform_indices = @transform_1, window_bounds = array<i64: 1, 2, 128>}, {transform_indices = @transform_2, window_bounds = array<i64: 1, 1, 8, 128>}]} {
    %cst = arith.constant 0.000000e+00 : f32
    %0 = vector.broadcast %cst : f32 to vector<8x128xf32>
    %c0_i32 = arith.constant 0 : i32
    %c2_i32 = arith.constant 2 : i32
    %1 = arith.muli %c0_i32, %c2_i32 : i32
    %c0 = arith.constant 0 : index
    %2 = arith.index_cast %1 : i32 to index
    %c0_0 = arith.constant 0 : index
    %3 = vector.load %arg3[%c0, %2, %c0_0] : memref<1x2x128xi32, #tpu.memory_space<vmem>>, vector<1x2x128xi32>
    %4 = vector.shape_cast %3 : vector<1x2x128xi32> to vector<2x128xi32>
    %c0_1 = arith.constant 0 : index
    %c0_2 = arith.constant 0 : index
    %5 = arith.index_cast %1 : i32 to index
    %c0_3 = arith.constant 0 : index
    %6 = vector.load %arg2[%c0_1, %c0_2, %5, %c0_3] : memref<1x4x2x128xf32, #tpu.memory_space<vmem>>, vector<1x1x2x128xf32>
    %7 = vector.shape_cast %6 : vector<1x1x2x128xf32> to vector<2x128xf32>
    %c1_i32 = arith.constant 1 : i32
    %8 = vector.broadcast %c1_i32 : i32 to vector<2x128xi32>
    %9 = arith.cmpi eq, %4, %8 : vector<2x128xi32>
    %c0_4 = arith.constant 0 : index
    %c1 = arith.constant 1 : index
    %10 = arith.index_cast %1 : i32 to index
    %c0_5 = arith.constant 0 : index
    %11 = vector.load %arg2[%c0_4, %c1, %10, %c0_5] : memref<1x4x2x128xf32, #tpu.memory_space<vmem>>, vector<1x1x2x128xf32>
    %12 = vector.shape_cast %11 : vector<1x1x2x128xf32> to vector<2x128xf32>
    %13 = arith.select %9, %12, %7 : vector<2x128xi1>, vector<2x128xf32>
    %c2_i32_6 = arith.constant 2 : i32
    %14 = vector.broadcast %c2_i32_6 : i32 to vector<2x128xi32>
    %15 = arith.cmpi eq, %4, %14 : vector<2x128xi32>
    %c0_7 = arith.constant 0 : index
    %c2 = arith.constant 2 : index
    %16 = arith.index_cast %1 : i32 to index
    %c0_8 = arith.constant 0 : index
    %17 = vector.load %arg2[%c0_7, %c2, %16, %c0_8] : memref<1x4x2x128xf32, #tpu.memory_space<vmem>>, vector<1x1x2x128xf32>
    %18 = vector.shape_cast %17 : vector<1x1x2x128xf32> to vector<2x128xf32>
    %19 = arith.select %15, %18, %13 : vector<2x128xi1>, vector<2x128xf32>
    %c3_i32 = arith.constant 3 : i32
    %20 = vector.broadcast %c3_i32 : i32 to vector<2x128xi32>
    %21 = arith.cmpi eq, %4, %20 : vector<2x128xi32>
    %c0_9 = arith.constant 0 : index
    %c3 = arith.constant 3 : index
    %22 = arith.index_cast %1 : i32 to index
    %c0_10 = arith.constant 0 : index
    %23 = vector.load %arg2[%c0_9, %c3, %22, %c0_10] : memref<1x4x2x128xf32, #tpu.memory_space<vmem>>, vector<1x1x2x128xf32>
    %24 = vector.shape_cast %23 : vector<1x1x2x128xf32> to vector<2x128xf32>
    %25 = arith.select %21, %24, %19 : vector<2x128xi1>, vector<2x128xf32>
    %cst_11 = arith.constant 9.99999997E-7 : f32
    %26 = vector.broadcast %cst_11 : f32 to vector<2x128xf32>
    %27 = arith.addf %25, %26 : vector<2x128xf32>
    %28 = math.log %27 : vector<2x128xf32>
    %cst_12 = arith.constant 1.000000e+00 : f32
    %29 = vector.broadcast %cst_12 : f32 to vector<2x128xf32>
    %30 = arith.subf %29, %27 : vector<2x128xf32>
    %31 = arith.mulf %30, %30 : vector<2x128xf32>
    %cst_13 = arith.constant 0.000000e+00 : f32
    %32 = vector.broadcast %cst_13 : f32 to vector<2x128xf32>
    %33 = arith.subf %32, %31 : vector<2x128xf32>
    %34 = arith.mulf %33, %28 : vector<2x128xf32>
    %cst_14 = arith.constant dense<0.000000e+00> : vector<128xf32>
    %35 = vector.multi_reduction <add>, %34, %cst_14 [0] : vector<2x128xf32> to vector<128xf32>
    %36 = vector.shape_cast %35 : vector<128xf32> to vector<1x128xf32>
    %37 = tpu.iota {dimensions = array<i32: 0>} : vector<8x128xi32>
    %c0_i32_15 = arith.constant 0 : i32
    %38 = vector.broadcast %c0_i32_15 : i32 to vector<8x128xi32>
    %39 = arith.cmpi eq, %37, %38 : vector<8x128xi32>
    %cst_16 = arith.constant 0.000000e+00 : f32
    %40 = vector.shape_cast %36 : vector<1x128xf32> to vector<1x128xf32>
    %41 = vector.broadcast %40 : vector<1x128xf32> to vector<8x128xf32>
    %42 = vector.broadcast %cst_16 : f32 to vector<8x128xf32>
    %43 = arith.select %39, %41, %42 : vector<8x128xi1>, vector<8x128xf32>
    %44 = arith.addf %0, %43 : vector<8x128xf32>
    %c1_i32_17 = arith.constant 1 : i32
    %c0_18 = arith.constant 0 : index
    %c0_19 = arith.constant 0 : index
    %c0_20 = arith.constant 0 : index
    %c0_21 = arith.constant 0 : index
    %45 = vector.load %arg4[%c0_18, %c0_19, %c0_20, %c0_21] : memref<1x1x8x128xf32, #tpu.memory_space<vmem>>, vector<1x1x8x128xf32>
    %46 = vector.shape_cast %45 : vector<1x1x8x128xf32> to vector<8x128xf32>
    %47 = vector.shape_cast %44 : vector<8x128xf32> to vector<1x1x8x128xf32>
    tpu.vector_store %arg4[%c0_18, %c0_19, %c0_20, %c0_21], %47 {strides = array<i32>} : memref<1x1x8x128xf32, #tpu.memory_space<vmem>>, vector<1x1x8x128xf32>,
    return
  }
  func.func @transform_0(%arg0: i32, %arg1: i32) -> (i32, i32, i32, i32) {
    %c0_i32 = arith.constant 0 : i32
    %c0_i32_0 = arith.constant 0 : i32
    %c0_i32_1 = arith.constant 0 : i32
    return %arg0, %c0_i32, %arg1, %c0_i32_0 : i32, i32, i32, i32
  }
  func.func @transform_1(%arg0: i32, %arg1: i32) -> (i32, i32, i32) {
    %c0_i32 = arith.constant 0 : i32
    %c0_i32_0 = arith.constant 0 : i32
    return %arg0, %arg1, %c0_i32 : i32, i32, i32
  }
  func.func @transform_2(%arg0: i32, %arg1: i32) -> (i32, i32, i32, i32) {
    %c0_i32 = arith.constant 0 : i32
    %c0_i32_0 = arith.constant 0 : i32
    %c0_i32_1 = arith.constant 0 : i32
    return %arg0, %arg1, %c0_i32, %c0_i32_0 : i32, i32, i32, i32
  }
}

</mosaic_0001>

<bundles_post_ra>
// kernel: tpu_custom_call.1
= control target key start
LH: loop header
LB: loop body
LE: loop exit
PB: predicated region body
PF: predicated region fallthrough
CT: control target
= control target key end

     0   :  { %7 = vsyncpa [#allocation3], 0  ;;  %s779_s0 = inlined_call_operand.hbm [shape: f32[2,4,2,128], index: 0, kind: input, shape index: {}]   ;;  %s780_s1 = inlined_call_operand.hbm [shape: s32[2,2,128], index: 1, kind: input, shape index: {}]   ;;  %s781_s2 = inlined_call_operand.hbm [shape: f32[2,1,8,128], index: 2, kind: output, shape index: {}]  }
   0x1   :  { %9 = vsyncpa [#allocation3 + $0x1], 0 }
   0x2   :  { %10 = vsyncpa [#allocation6], 0 }
   0x3   :  { %12 = vsyncpa [#allocation6 + $0x1], 0 }
   0x4   :  { %13 = vsyncpa [#allocation4], 0 }
   0x5   :  { %15 = vsyncpa [#allocation4 + $0x1], 0  ;;  %s637_s9 = smov 0   ;;  %s639_s10 = smov 0  }
   0x6   :  { %s641_s11 = smov 0   ;;  %s643_s12 = smov 0  }
   0x7   :  { %s645_s13 = smov 0   ;;  %s647_s14 = smov 0  }
   0x8 LB: > { %s380_s15 = sadd.s32 4294967295, %s618_s14   ;;  %s381_s16 = sadd.s32 4294967294, %s618_s14   ;;  %s618_s14 = sphi %s647_s14, %s21_s14   ;;  %s614_s13 = sphi %s645_s13, %s791_s13   ;;  %s610_s12 = sphi %s643_s12, %s790_s12   ;;  %s606_s11 = sphi %s641_s11, %s789_s11   ;;  %s602_s10 = sphi %s639_s10, %s788_s10   ;;  %s598_s9 = sphi %s637_s9, %s787_s9  }
   0x9   : > { %s33_s17 = sadd.s32 1, %s614_s13  ;;  %s42_s18 = sadd.s32 1, %s606_s11 }
   0xa   : > { %p35_p0 = scmp.ge.s32.totalorder %s33_s17, 2  ;;  %p49_p1 = scmp.ne.s32.totalorder %s606_s11, %s602_s10 }
   0xb   : > { %p50_p2 = scmp.eq.s32.totalorder %s618_s14, 0  ;;  %p55_p3 = scmp.ne.s32.totalorder %s602_s10, %s598_s9 }
   0xc   : > { %s793_s17 = smov (%p35_p0, %s33_s17), 0  ;;  %p56_p5 = scmp.eq.s32.totalorder %s380_s15, 0 }
   0xd   : > { %p678_p4 = por %p50_p2, %p49_p1  ;;  %s37_s20 = ssub.s32 %s614_s13, %s793_s17 }
   0xe   : > { %p109_p6 = scmp.eq.s32.totalorder %s380_s15, 1  ;;  %p40_p7 = scmp.eq.s32.totalorder %s37_s20, 0 }
   0xf   : > { %p684_p8 = por %p56_p5, %p55_p3  ;;  %p115_p10 = scmp.eq.s32.totalorder %s381_s16, 1 }
  0x10   : > { %p688_p9 = por %p109_p6, %p49_p1  ;;  %p383_p12 = scmp.ge.s32.totalorder %s618_s14, 2 }
  0x11   : > { %s693_s23 = scalar_select %p40_p7, %s606_s11, %s42_s18  }
  0x12   : > { %p695_p11 = por %p115_p10, %p55_p3  ;;  %p418_p13 = scmp.lt.s32.totalorder %s618_s14, 2 }
  0x13   : > { %s135_s25 = sand.u32 1, %s606_s11   ;;  %s400_s27 = sshll.u32 %s614_s13, 3 }
  0x14   : > { %s384_s26 = sshll.u32 %s135_s25, 3  ;;  %s145_s30 = scalar_lea.hbm %s779_s0, %s400_s27 }
  0x15   : > { %s139_s3 = scalar_lea.vmem [#allocation2], %s384_s26  ;;  %s146_s5 = sshll.u32 %s145_s30, 4  ;;  %s147_s5 = int_to_ptr.hbm [resolvable:$true] %s146_s5 }
  0x16   : > { %s148_s4 = sshll.u32 %s139_s3, 4  ;;  %p708_p0 = pnand %p418_p13, %p678_p4  ;;  %s149_s4 = int_to_ptr.vmem [resolvable:$true] %s148_s4 }
  0x17   : > { %p389_p1 = scmp.ge.s32.totalorder %s618_s14, 1  ;;  %s136_s7 = scalar_lea.sflag [#allocation3], %s135_s25 }
  0x18   : > { %s620_s8 = smov 32   ;;  %s621_s15 = smov 2  }
  0x19   : > { %410 = dma.hbm_to_vmem [thread:$0]  (!%p708_p0), %s147_s5, 128, %s149_s4, %s136_s7, %s620_s8, %s620_s8, %s621_s15  }
  0x1a   : > { %p176_p2 = scmp.lt.s32.totalorder %s618_s14, 3  ;;  %s387_s16 = sshll.u32 %s135_s25, 1 }
  0x1b   : > { %s388_s18 = sshll.u32 %s614_s13, 1  ;;  %s162_s27 = scalar_lea.vmem [#allocation5], %s387_s16 }
  0x1c   : > { %p177_p3 = pnand %p389_p1, %p176_p2  ;;  %s167_s19 = scalar_lea.hbm %s780_s1, %s388_s18 }
  0x1d   : > { %s171_s28 = sshll.u32 %s162_s27, 4  ;;  %s169_s29 = sshll.u32 %s167_s19, 4  ;;  %s172_s28 = int_to_ptr.vmem [resolvable:$true] %s171_s28  ;;  %s170_s29 = int_to_ptr.hbm [resolvable:$true] %s169_s29 }
  0x1e   : > { %s159_s30 = scalar_lea.sflag [#allocation6], %s135_s25  ;;  %180 = sbr.rel (%p177_p3) target bundleno = 74 (0x4a), region = 28 }
  0x1f   : > { %413 = dma.hbm_to_vmem [thread:$0]  (!%p708_p0), %s170_s29, 32, %s172_s28, %s159_s30  }
  0x20   : > { %s723_s3 = sand.u32 (!%p177_p3), 1, %s602_s10  }
  0x21   : > { %s390_s4 = sshll.u32 (!%p177_p3), %s723_s3, 3  ;;  %s183_s5 = scalar_lea.sflag (!%p177_p3), [#allocation3], %s723_s3 }
  0x22   : > { %s186_s7 = scalar_lea.vmem (!%p177_p3), [#allocation2], %s390_s4 }
  0x23   : > { %585 = dma.done.wait (%p684_p8), %s183_s5, 128  }
  0x24   : > { %587 = vsyncadd (%p684_p8), %s183_s5, 4294967168  ;;  %s391_s25 = sshll.u32 %s723_s3, 1  ;;  %s193_s6 = scalar_lea.sflag [#allocation6], %s723_s3 }
  0x25   : > { %s196_s8 = scalar_lea.vmem [#allocation5], %s391_s25 }
  0x26   : > { %589 = dma.done.wait (%p684_p8), %s193_s6, 32  }
  0x27   : > { %591 = vsyncadd (%p684_p8), %s193_s6, 4294967264  ;;  %v223_v0 = vld [vmem:[%s196_s8] sm:$0x3]  ;;  %v224_v1 = vld [vmem:[%s186_s7] sm:$0x3]  ;;  %vm244_vm3 = vcmask 1041408   ;;  %v252_v17 = vlaneseq }
  0x28   : > { %v393_v2 = vld [vmem:[%s186_s7 + $0x2] sm:$0x3]  ;;  %vm225_vm0 = vcmp.eq.s32.totalorder %v223_v0, 1  ;;  %vm229_vm1 = vcmp.eq.s32.totalorder %v223_v0, 2  ;;  %v394_v3 = vld [vmem:[%s186_s7 + $0x4] sm:$0x3] }
  0x29   : > { %vm233_vm2 = vcmp.eq.s32.totalorder %v223_v0, 3  ;;  %v228_v4 = vsel %vm225_vm0, %v393_v2, %v224_v1  ;;  %v395_v5 = vld [vmem:[%s186_s7 + $0x6] sm:$0x3]  ;;  %s397_s21 = sshll.u32 %s610_s12, 3  ;;  %v253_v20 = vshrl.u32 %v252_v17, 7  ;;  %s222_s20 = scalar_lea.vmem [#allocation7], %s390_s4 }
  0x2a   : > { %v232_v6 = vsel %vm229_vm1, %v394_v3, %v228_v4  ;;  %s270_s18 = scalar_lea.hbm %s781_s2, %s397_s21  ;;  %s272_s26 = sshll.u32 %s222_s20, 4  ;;  %s273_s26 = int_to_ptr.vmem [resolvable:$true] %s272_s26 }
  0x2b   : > { %v236_v7 = vsel %vm233_vm2, %v395_v5, %v232_v6  ;;  %s274_s19 = sshll.u32 %s270_s18, 4  ;;  %vm254_vm4 = vcmp.eq.s32.totalorder %v253_v20, 0  ;;  %s259_s12 = scalar_lea.sflag [#allocation4], %s723_s3  ;;  %s275_s19 = int_to_ptr.hbm [resolvable:$true] %s274_s19 }
  0x2c   : > { %v237_v8 = vadd.f32 1e-06, %v236_v7  ;;  %s546_s27 = sshra.s32 %s275_s19, 4  ;;  %s552_s4 = scalar_lea.hbm %s781_s2, 16  ;;  %s547_s27 = int_to_ptr.hbm [resolvable:$true] %s546_s27 }
  0x2d   : > { %s548_s28 = scalar_lea.hbm %s547_s27, 8  ;;  %p553_p7 = scmp.lt.s32.totalorder %s547_s27, %s781_s2 }
  0x2e   : > { %470 = vlog2.f32 %v237_v8  ;;  %v240_v9 = vsub.f32 1.0, %v237_v8  ;;  %p549_p4 = scmp.ne.s32.totalorder %s547_s27, %s548_s28  ;;  %p554_p8 = scmp.lt.s32.totalorder %s552_s4, %s548_s28 }
  0x30   : > { %v241_v10 = vmul.f32 %v240_v9, %v240_v9  ;;  %p550_p5 = pnand %p549_p4, %p688_p9  ;;  %p555_p10 = por %p554_p8, %p553_p7 }
  0x32   : > { %v242_v11 = vsub.f32 0.0, %v241_v10  ;;  %p551_p6 = pneg %p550_p5 }
  0x34   : > { %v471_v12 = vpop.eup %470  ;;  %p556_p13 = pnand %p555_p10, %p551_p6 }
  0x35   : > { %v239_v13 = vmul.f32 0.6931472, %v471_v12 }
  0x37   : > { %v243_v14 = vmul.f32 %v242_v11, %v239_v13 }
  0x39   : > { %v245_v15 = vsel %vm244_vm3, %v243_v14, 0.0 }
  0x3a   : > { %v246_v16 = vrot.slane %v245_v15, 4 }
  0x3c   : > { %v247_v18 = vadd.f32 %v246_v16, %v245_v15 }
  0x3e   : > { %v248_v19 = vrot.slane %v247_v18, 2 }
  0x40   : > { %v249_v21 = vadd.f32 %v248_v19, %v247_v18 }
  0x42   : > { %v250_v22 = vrot.slane %v249_v21, 1 }
  0x44   : > { %v251_v23 = vadd.f32 %v250_v22, %v249_v21 }
  0x46   : > { %v255_v24 = vsel %vm254_vm4, %v251_v23, 0.0 }
  0x47   : > { %257 = vst [vmem:[%s222_s20] sm:$0xff] %v255_v24 }
  0x48   : > { %559 = shalt.err (!%p556_p13)
}
  0x49   : > { %405 = dma.vmem_to_hbm [thread:$0]  (%p688_p9), %s273_s26, 128, %s275_s19, %s259_s12  }
  0x4a PF: > { %s286_s3 = sand.u32 1, %s598_s9   ;;  %p415_p0 = pnand %p383_p12, %p695_p11 }
  0x4b   : > { %s287_s25 = scalar_lea.sflag [#allocation4], %s286_s3 }
  0x4c   : > { %p416_p1 = pneg %p415_p0 }
  0x4e   : > { %593 = dma.done.wait (%p416_p1), %s287_s25, 128  }
  0x4f   : > { %595 = vsyncadd (%p416_p1), %s287_s25, 4294967168  ;;  %s21_s14 = sadd.s32 1, %s618_s14   ;;  %s787_s9 = smov %s602_s10 }
  0x50   : > { %p18_p2 = scmp.ge.s32.totalorder %s21_s14, 4   ;;  %s788_s10 = smov %s606_s11 }
  0x51   : > { %s789_s11 = smov %s693_s23  ;;  %s790_s12 = smov %s614_s13 }
  0x52   : > { %s791_s13 = smov %s793_s17  ;;  %20 = sbr.rel (!%p18_p2) target bundleno = 8 (0x8), region = 89 }
  0x57   :  { %293 = vsyncpa [#allocation3], 1 }
  0x58   :  { %295 = vsyncpa [#allocation3 + $0x1], 1 }
  0x59   :  { %296 = vsyncpa [#allocation6], 1 }
  0x5a   :  { %298 = vsyncpa [#allocation6 + $0x1], 1 }
  0x5b   :  { %299 = vsyncpa [#allocation4], 1 }
  0x5c   :  { %301 = vsyncpa [#allocation4 + $0x1], 1 }

</bundles_post_ra>
